<compile_context>
chip_gen: v7x
topology: tpu7x:2x2x1
jax: 0.10.0
libtpu: 0.0.40
codegen_flags: <defaults>
</compile_context>

<pallas_src>
import math

import jax
import jax.numpy as jnp
from jax.experimental import pallas as pl
from jax.experimental.pallas import tpu as pltpu

_LANES = 128
_LOG_EPS = math.log(1e-5)
_LOG_1M_EPS = math.log(1.0 - 1e-5)


def _loss_ce_kernel(pred_ref, lab_ref, out_ref):
    # pred_ref: (1, 2, TR, 128)   lab_ref: (1, TR, 128)   out_ref: (1, 8, 128)
    x0 = pred_ref[0, 0, :, :].astype(jnp.float32)   # channel 0, (TR, 128)
    x1 = pred_ref[0, 1, :, :].astype(jnp.float32)   # channel 1, (TR, 128)
    y = lab_ref[0, :, :].astype(jnp.float32)        # (TR, 128)

    # Numerically-stable 2-way log-softmax (log-space; clip commutes with log).
    d = x0 - x1
    m = jnp.maximum(x0, x1)
    lse = m + jnp.log(1.0 + jnp.exp(-jnp.abs(d)))   # logsumexp(x0, x1)

    logp0 = jnp.clip(x0 - lse, _LOG_EPS, _LOG_1M_EPS)
    logp1 = jnp.clip(x1 - lse, _LOG_EPS, _LOG_1M_EPS)

    elem = -(y * logp0 + (1.0 - y) * logp1)         # (TR, 128)

    # Per-tile partial sums, written as a lane-dense (8,128) block:
    # row 0 holds the per-lane column sums, rows 1..7 are zero.
    colsum = jnp.sum(elem, axis=0, keepdims=True)   # (1, 128)
    rows = jax.lax.broadcasted_iota(jnp.int32, (8, _LANES), 0)
    out_ref[0, :, :] = jnp.where(rows == 0, colsum, 0.0)


def _pick_row_tile(rows):
    # Largest sublane-aligned tile (<= 1024 rows, ~1 MiB f32 pred block) that
    # divides the row count; fall back to the full extent for tiny inputs.
    for t in (1024, 512, 256, 128, 64, 32, 16, 8):
        if rows % t == 0:
            return t
    return rows


def loss_ce(pred, labels):
    """pred: [B, 2, H, W]; labels: [B, H, W]. Returns scalar f32 loss."""
    B, C, H, W = pred.shape
    assert C == 2, "loss_ce expects exactly 2 channels"
    assert labels.shape == (B, H, W)

    hw = H * W
    # TODO(synk): pad + mask the last tile for spatial sizes not divisible by 128.
    assert hw % _LANES == 0, "H*W must be a multiple of 128"
    R = hw // _LANES
    TR = _pick_row_tile(R)
    nj = R // TR

    # Free, copy-less reshapes (row-major contiguous): no channel-split copies.
    pred4 = pred.reshape(B, 2, R, _LANES)
    lab3 = labels.reshape(B, R, _LANES)

    partials = pl.pallas_call(
        _loss_ce_kernel,
        out_shape=jax.ShapeDtypeStruct((B * nj, 8, _LANES), jnp.float32),
        grid_spec=pltpu.PrefetchScalarGridSpec(
            num_scalar_prefetch=0,
            grid=(B, nj),
            in_specs=[
                # One spec covers both channels of pred -> no pre-copy.
                pl.BlockSpec((1, 2, TR, _LANES), lambda b, j: (b, 0, j, 0)),
                pl.BlockSpec((1, TR, _LANES), lambda b, j: (b, j, 0)),
            ],
            out_specs=pl.BlockSpec(
                (1, 8, _LANES), lambda b, j: (b * nj + j, 0, 0)),
        ),
        compiler_params=pltpu.CompilerParams(
            dimension_semantics=("parallel", "parallel")),
    )(pred4, lab3)

    # Tiny final reduction + mean in plain JAX.
    return jnp.sum(partials) / jnp.float32(B * hw)


def _loss_ce_reference(pred, labels):
    p = jax.nn.softmax(pred.astype(jnp.float32), axis=1)
    p = jnp.clip(p, 1e-5, 1.0 - 1e-5)
    t1 = jnp.log(p[:, 0, :, :])
    t2 = jnp.log(p[:, 1, :, :])
    y = labels.astype(jnp.float32)
    return jnp.mean(-(y * t1 + (1.0 - y) * t2))


if __name__ == "__main__":
    key = jax.random.PRNGKey(0)

    # Test 1: small shape consistent with the module (B=4, C=2, H=W=16).
    kp, kl, key = jax.random.split(key, 3)
    pred = jax.random.normal(kp, (4, 2, 16, 16), dtype=jnp.float32) * 4.0
    labels = (jax.random.uniform(kl, (4, 16, 16)) > 0.5).astype(jnp.float32)
    loss = jax.block_until_ready(loss_ce(pred, labels))
    ref = jax.block_until_ready(_loss_ce_reference(pred, labels))
    assert jnp.allclose(loss, ref, rtol=1e-4, atol=1e-5), (loss, ref)

    # Test 2: slightly larger spatial extent (exercises multi-row tiles).
    kp, kl = jax.random.split(key)
    pred2 = jax.random.normal(kp, (2, 2, 32, 32), dtype=jnp.float32) * 4.0
    labels2 = (jax.random.uniform(kl, (2, 32, 32)) > 0.5).astype(jnp.float32)
    loss2 = jax.block_until_ready(loss_ce(pred2, labels2))
    ref2 = jax.block_until_ready(_loss_ce_reference(pred2, labels2))
    assert jnp.allclose(loss2, ref2, rtol=1e-4, atol=1e-5), (loss2, ref2)

    print("KERNEL_OK")
</pallas_src>

<mosaic_0001>
module attributes {stable_mosaic.version = 11 : i64} {
  func.func @_loss_ce_kernel(%arg0: i32, %arg1: i32, %arg2: memref<1x2x2x128xf32, #tpu.memory_space<vmem>>, %arg3: memref<1x2x128xf32, #tpu.memory_space<vmem>>, %arg4: memref<1x8x128xf32, #tpu.memory_space<vmem>>) attributes {dimension_semantics = [#tpu.dimension_semantics<parallel>, #tpu.dimension_semantics<parallel>], iteration_bounds = array<i64: 4, 1>, scalar_prefetch = 0 : i64, scratch_operands = 0 : i64, tpu.core_type = #tpu.core_type<tc>, window_params = [{transform_indices = @transform_0, window_bounds = array<i64: 1, 2, 2, 128>}, {transform_indices = @transform_1, window_bounds = array<i64: 1, 2, 128>}, {transform_indices = @transform_2, window_bounds = array<i64: 1, 8, 128>}]} {
    %c0 = arith.constant 0 : index
    %c0_0 = arith.constant 0 : index
    %c0_1 = arith.constant 0 : index
    %c0_2 = arith.constant 0 : index
    %0 = vector.load %arg2[%c0, %c0_0, %c0_1, %c0_2] : memref<1x2x2x128xf32, #tpu.memory_space<vmem>>, vector<1x1x2x128xf32>
    %1 = vector.shape_cast %0 : vector<1x1x2x128xf32> to vector<2x128xf32>
    %c0_3 = arith.constant 0 : index
    %c1 = arith.constant 1 : index
    %c0_4 = arith.constant 0 : index
    %c0_5 = arith.constant 0 : index
    %2 = vector.load %arg2[%c0_3, %c1, %c0_4, %c0_5] : memref<1x2x2x128xf32, #tpu.memory_space<vmem>>, vector<1x1x2x128xf32>
    %3 = vector.shape_cast %2 : vector<1x1x2x128xf32> to vector<2x128xf32>
    %c0_6 = arith.constant 0 : index
    %c0_7 = arith.constant 0 : index
    %c0_8 = arith.constant 0 : index
    %4 = vector.load %arg3[%c0_6, %c0_7, %c0_8] : memref<1x2x128xf32, #tpu.memory_space<vmem>>, vector<1x2x128xf32>
    %5 = vector.shape_cast %4 : vector<1x2x128xf32> to vector<2x128xf32>
    %6 = arith.subf %1, %3 : vector<2x128xf32>
    %7 = arith.maximumf %1, %3 : vector<2x128xf32>
    %8 = math.absf %6 : vector<2x128xf32>
    %cst = arith.constant 0.000000e+00 : f32
    %9 = vector.broadcast %cst : f32 to vector<2x128xf32>
    %10 = arith.subf %9, %8 : vector<2x128xf32>
    %11 = math.exp %10 : vector<2x128xf32>
    %cst_9 = arith.constant 1.000000e+00 : f32
    %12 = vector.broadcast %cst_9 : f32 to vector<2x128xf32>
    %13 = arith.addf %12, %11 : vector<2x128xf32>
    %14 = math.log %13 : vector<2x128xf32>
    %15 = arith.addf %7, %14 : vector<2x128xf32>
    %16 = arith.subf %1, %15 : vector<2x128xf32>
    %cst_10 = arith.constant -11.5129251 : f32
    %cst_11 = arith.constant -1.00000498E-5 : f32
    %17 = vector.broadcast %cst_10 : f32 to vector<2x128xf32>
    %18 = arith.maximumf %17, %16 : vector<2x128xf32>
    %19 = vector.broadcast %cst_11 : f32 to vector<2x128xf32>
    %20 = arith.minimumf %19, %18 : vector<2x128xf32>
    %21 = arith.subf %3, %15 : vector<2x128xf32>
    %cst_12 = arith.constant -11.5129251 : f32
    %cst_13 = arith.constant -1.00000498E-5 : f32
    %22 = vector.broadcast %cst_12 : f32 to vector<2x128xf32>
    %23 = arith.maximumf %22, %21 : vector<2x128xf32>
    %24 = vector.broadcast %cst_13 : f32 to vector<2x128xf32>
    %25 = arith.minimumf %24, %23 : vector<2x128xf32>
    %26 = arith.mulf %5, %20 : vector<2x128xf32>
    %cst_14 = arith.constant 1.000000e+00 : f32
    %27 = vector.broadcast %cst_14 : f32 to vector<2x128xf32>
    %28 = arith.subf %27, %5 : vector<2x128xf32>
    %29 = arith.mulf %28, %25 : vector<2x128xf32>
    %30 = arith.addf %26, %29 : vector<2x128xf32>
    %cst_15 = arith.constant 0.000000e+00 : f32
    %31 = vector.broadcast %cst_15 : f32 to vector<2x128xf32>
    %32 = arith.subf %31, %30 : vector<2x128xf32>
    %cst_16 = arith.constant dense<0.000000e+00> : vector<128xf32>
    %33 = vector.multi_reduction <add>, %32, %cst_16 [0] : vector<2x128xf32> to vector<128xf32>
    %34 = vector.shape_cast %33 : vector<128xf32> to vector<1x128xf32>
    %35 = tpu.iota {dimensions = array<i32: 0>} : vector<8x128xi32>
    %c0_i32 = arith.constant 0 : i32
    %36 = vector.broadcast %c0_i32 : i32 to vector<8x128xi32>
    %37 = arith.cmpi eq, %35, %36 : vector<8x128xi32>
    %cst_17 = arith.constant 0.000000e+00 : f32
    %38 = vector.shape_cast %34 : vector<1x128xf32> to vector<1x128xf32>
    %39 = vector.broadcast %38 : vector<1x128xf32> to vector<8x128xf32>
    %40 = vector.broadcast %cst_17 : f32 to vector<8x128xf32>
    %41 = arith.select %37, %39, %40 : vector<8x128xi1>, vector<8x128xf32>
    %c0_18 = arith.constant 0 : index
    %c0_19 = arith.constant 0 : index
    %c0_20 = arith.constant 0 : index
    %42 = vector.load %arg4[%c0_18, %c0_19, %c0_20] : memref<1x8x128xf32, #tpu.memory_space<vmem>>, vector<1x8x128xf32>
    %43 = vector.shape_cast %42 : vector<1x8x128xf32> to vector<8x128xf32>
    %44 = vector.shape_cast %41 : vector<8x128xf32> to vector<1x8x128xf32>
    tpu.vector_store %arg4[%c0_18, %c0_19, %c0_20], %44 {strides = array<i32>} : memref<1x8x128xf32, #tpu.memory_space<vmem>>, vector<1x8x128xf32>,
    return
  }
  func.func @transform_0(%arg0: i32, %arg1: i32) -> (i32, i32, i32, i32) {
    %c0_i32 = arith.constant 0 : i32
    %c0_i32_0 = arith.constant 0 : i32
    %c0_i32_1 = arith.constant 0 : i32
    return %arg0, %c0_i32, %arg1, %c0_i32_0 : i32, i32, i32, i32
  }
  func.func @transform_1(%arg0: i32, %arg1: i32) -> (i32, i32, i32) {
    %c0_i32 = arith.constant 0 : i32
    %c0_i32_0 = arith.constant 0 : i32
    return %arg0, %arg1, %c0_i32 : i32, i32, i32
  }
  func.func @transform_2(%arg0: i32, %arg1: i32) -> (i32, i32, i32) {
    %c1_i32 = arith.constant 1 : i32
    %0 = arith.muli %arg0, %c1_i32 : i32
    %1 = arith.addi %0, %arg1 : i32
    %c0_i32 = arith.constant 0 : i32
    %c0_i32_0 = arith.constant 0 : i32
    %c0_i32_1 = arith.constant 0 : i32
    return %1, %c0_i32, %c0_i32_0 : i32, i32, i32
  }
}

</mosaic_0001>

<bundles_post_ra>
// kernel: tpu_custom_call.1
= control target key start
LH: loop header
LB: loop body
LE: loop exit
PB: predicated region body
PF: predicated region fallthrough
CT: control target
= control target key end

     0   :  { %7 = vsyncpa [#allocation3], 0  ;;  %s852_s0 = inlined_call_operand.hbm [shape: f32[4,2,2,128], index: 0, kind: input, shape index: {}]   ;;  %s853_s1 = inlined_call_operand.hbm [shape: f32[4,2,128], index: 1, kind: input, shape index: {}]   ;;  %s854_s2 = inlined_call_operand.hbm [shape: f32[4,8,128], index: 2, kind: output, shape index: {}]  }
   0x1   :  { %9 = vsyncpa [#allocation3 + $0x1], 0 }
   0x2   :  { %10 = vsyncpa [#allocation6], 0 }
   0x3   :  { %12 = vsyncpa [#allocation6 + $0x1], 0 }
   0x4   :  { %13 = vsyncpa [#allocation4], 0 }
   0x5   :  { %15 = vsyncpa [#allocation4 + $0x1], 0  ;;  %s638_s9 = smov 0   ;;  %s640_s10 = smov 0  }
   0x6   :  { %s642_s11 = smov 0   ;;  %s644_s12 = smov 0  }
   0x7   :  { %s646_s13 = smov 0   ;;  %s648_s14 = smov 0  }
   0x8 LB: > { %s378_s15 = sadd.s32 4294967295, %s616_s14   ;;  %s379_s16 = sadd.s32 4294967294, %s616_s14   ;;  %s616_s14 = sphi %s648_s14, %s21_s14   ;;  %s612_s13 = sphi %s646_s13, %s872_s13   ;;  %s608_s12 = sphi %s644_s12, %s871_s12   ;;  %s604_s11 = sphi %s642_s11, %s870_s11   ;;  %s600_s10 = sphi %s640_s10, %s869_s10   ;;  %s596_s9 = sphi %s638_s9, %s868_s9  }
   0x9   : > { %s33_s17 = sadd.s32 1, %s612_s13  ;;  %s42_s18 = sadd.s32 1, %s604_s11 }
   0xa   : > { %p35_p0 = scmp.ge.s32.totalorder %s33_s17, 4  ;;  %p49_p1 = scmp.ne.s32.totalorder %s604_s11, %s600_s10 }
   0xb   : > { %p50_p2 = scmp.eq.s32.totalorder %s616_s14, 0  ;;  %p55_p3 = scmp.ne.s32.totalorder %s600_s10, %s596_s9 }
   0xc   : > { %s874_s17 = smov (%p35_p0, %s33_s17), 0  ;;  %p56_p5 = scmp.eq.s32.totalorder %s378_s15, 0 }
   0xd   : > { %p679_p4 = por %p50_p2, %p49_p1  ;;  %s37_s20 = ssub.s32 %s612_s13, %s874_s17 }
   0xe   : > { %p109_p6 = scmp.eq.s32.totalorder %s378_s15, 3  ;;  %p40_p7 = scmp.eq.s32.totalorder %s37_s20, 0 }
   0xf   : > { %p685_p8 = por %p56_p5, %p55_p3  ;;  %p115_p10 = scmp.eq.s32.totalorder %s379_s16, 3 }
  0x10   : > { %p689_p9 = por %p109_p6, %p49_p1  ;;  %p414_p12 = scmp.lt.s32.totalorder %s616_s14, 4 }
  0x11   : > { %s858_s21 = scalar_select %p685_p8, 1, 0 }
  0x12   : > { %s859_s22 = scalar_select %p689_p9, 1, 0 }
  0x13   : > { %s694_s23 = scalar_select %p40_p7, %s604_s11, %s42_s18  }
  0x14   : > { %p696_p11 = por %p115_p10, %p55_p3  ;;  %s702_s25 = sand.u32 1, %s604_s11  }
  0x15   : > { %s382_s26 = sshll.u32 %s702_s25, 2  ;;  %s396_s27 = sshll.u32 %s612_s13, 6 }
  0x16   : > { %s860_s24 = scalar_select %p696_p11, 1, 0 }
  0x17   : > { %s709_s30 = scalar_lea.hbm %s852_s0, %s396_s27  ;;  %s139_s3 = scalar_lea.vmem [#allocation2], %s382_s26 }
  0x18   : > { %s147_s4 = sshll.u32 %s139_s3, 4  ;;  %p715_p13 = pnand %p414_p12, %p679_p4  ;;  %s711_s4 = int_to_ptr.vmem [resolvable:$true] %s147_s4 }
  0x19   : > { %s136_s6 = scalar_lea.sflag [#allocation3], %s702_s25  ;;  %s470_s7 = scalar_lea.hbm %s709_s30, 64 }
  0x1a   : > { %p471_p1 = scmp.ne.s32.totalorder %s709_s30, %s470_s7  ;;  %p472_p2 = pneg %p715_p13 }
  0x1b   : > { %s475_s16 = scalar_lea.hbm %s852_s0, 256  ;;  %p476_p4 = scmp.lt.u32.totalorder %s709_s30, %s852_s0 }
  0x1c   : > { %p473_p3 = pnand %p472_p2, %p471_p1  ;;  %p477_p6 = scmp.lt.u32.totalorder %s475_s16, %s470_s7 }
  0x1d   : > { %p479_p10 = scmp.lt.u32.totalorder %s470_s7, %s709_s30 }
  0x1e   : > { %p474_p5 = pneg %p473_p3  ;;  %p478_p7 = por %p477_p6, %p476_p4 }
  0x20   : > { %p480_p12 = por %p479_p10, %p478_p7 }
  0x22   : > { %p481_p0 = pnand %p480_p12, %p474_p5 }
  0x24   : > { %484 = shalt.err (!%p481_p0)
}
  0x25   : > { %s485_s20 = scalar_lea.vmem %s711_s4, 64  ;;  %s618_s26 = smov [#allocation2]  }
  0x26   : > { %p486_p1 = scmp.ne.s32.totalorder %s711_s4, %s485_s20  ;;  %s490_s27 = sshll.u32 %s618_s26, 4  ;;  %s491_s27 = int_to_ptr.vmem [resolvable:$false] %s490_s27 }
  0x27   : > { %s492_s28 = scalar_lea.vmem %s491_s27, 128  ;;  %p493_p9 = scmp.lt.s32.totalorder %s711_s4, %s491_s27 }
  0x28   : > { %p488_p3 = pnand %p486_p1, %p472_p2  ;;  %p494_p4 = scmp.lt.s32.totalorder %s492_s28, %s485_s20 }
  0x2a   : > { %p489_p11 = pneg %p488_p3  ;;  %p495_p6 = por %p494_p4, %p493_p9 }
  0x2c   : > { %p496_p7 = pnand %p495_p6, %p489_p11 }
  0x2e   : > { %499 = shalt.err (!%p496_p7)
}
  0x2f   : > { %s619_s29 = smov 32   ;;  %s620_s3 = smov 2  }
  0x30   : > { %406 = dma.hbm_to_vmem [thread:$0]  (!%p715_p13), %s709_s30, 64, %s711_s4, %s136_s6, %s619_s29, %s619_s29, %s620_s3  }
  0x31   : > { %p174_p0 = scmp.lt.s32.totalorder %s616_s14, 5  ;;  %s385_s7 = sshll.u32 %s702_s25, 1 }
  0x32   : > { %s386_s8 = sshll.u32 %s612_s13, 5  ;;  %p862_p9 = scmp.ge.s32.totalorder %s616_s14, 1 }
  0x33   : > { %s760_s19 = scalar_lea.hbm %s853_s1, %s386_s8  ;;  %s161_s20 = scalar_lea.vmem [#allocation5], %s385_s7 }
  0x34   : > { %p753_p11 = pnand %p862_p9, %p174_p0  ;;  %s169_s26 = sshll.u32 %s161_s20, 4  ;;  %s170_s26 = int_to_ptr.vmem [resolvable:$true] %s169_s26 }
  0x35   : > { %s158_s30 = scalar_lea.sflag [#allocation6], %s702_s25  ;;  %s500_s4 = scalar_lea.hbm %s760_s19, 32 }
  0x36   : > { %s863_s15 = scalar_select %p753_p11, 1, 0 }
  0x37   : > { %p501_p5 = scmp.ne.s32.totalorder %s760_s19, %s500_s4  ;;  %s505_s28 = scalar_lea.hbm %s853_s1, 128 }
  0x38   : > { %p506_p1 = scmp.lt.u32.totalorder %s760_s19, %s853_s1  ;;  %p507_p3 = scmp.lt.u32.totalorder %s505_s28, %s500_s4 }
  0x39   : > { %p503_p10 = pnand %p501_p5, %p472_p2  ;;  %p509_p6 = scmp.lt.u32.totalorder %s500_s4, %s760_s19 }
  0x3a   : > { %p508_p4 = por %p507_p3, %p506_p1 }
  0x3b   : > { %p504_p12 = pneg %p503_p10 }
  0x3c   : > { %p510_p7 = por %p509_p6, %p508_p4 }
  0x3e   : > { %p511_p0 = pnand %p510_p7, %p504_p12 }
  0x40   : > { %514 = shalt.err (!%p511_p0)
}
  0x41   : > { %s515_s25 = scalar_lea.vmem %s170_s26, 32  ;;  %s621_s7 = smov [#allocation5]  }
  0x42   : > { %p516_p9 = scmp.ne.s32.totalorder %s170_s26, %s515_s25  ;;  %s520_s8 = sshll.u32 %s621_s7, 4  ;;  %s521_s8 = int_to_ptr.vmem [resolvable:$false] %s520_s8 }
  0x43   : > { %s522_s16 = scalar_lea.vmem %s521_s8, 64  ;;  %p523_p8 = scmp.lt.s32.totalorder %s170_s26, %s521_s8 }
  0x44   : > { %p518_p5 = pnand %p516_p9, %p472_p2  ;;  %p524_p11 = scmp.lt.s32.totalorder %s522_s16, %s515_s25 }
  0x46   : > { %p519_p10 = pneg %p518_p5  ;;  %p525_p1 = por %p524_p11, %p523_p8 }
  0x48   : > { %p526_p3 = pnand %p525_p1, %p519_p10 }
  0x4a   : > { %529 = shalt.err (!%p526_p3)
}
  0x4b   : > { %409 = dma.hbm_to_vmem [thread:$0]  (!%p715_p13), %s760_s19, 32, %s170_s26, %s158_s30  }
  0x4c   : > { %p864_p12 = scmp.ne.s32.totalorder %s863_s15, 0 }
  0x4d   : > { %s785_s18 = sand.u32 (!%p864_p12), 1, %s600_s10   ;;  %p865_p2 = scmp.ne.s32.totalorder (!%p864_p12), %s858_s21, 0 }
  0x4e   : > { %178 = sbr.rel (%p864_p12) target bundleno = 166 (0xa6), region = 28  ;;  %s388_s20 = sshll.u32 (!%p864_p12), %s785_s18, 2 }
  0x4f   : > { %s181_s4 = scalar_lea.sflag (!%p864_p12), [#allocation3], %s785_s18  ;;  %s184_s6 = scalar_lea.vmem (!%p864_p12), [#allocation2], %s388_s20 }
  0x55   : > { %583 = dma.done.wait (%p865_p2), %s181_s4, 64  }
  0x56   : > { %585 = vsyncadd (%p865_p2), %s181_s4, 4294967232  ;;  %s389_s5 = sshll.u32 %s785_s18, 1  ;;  %s190_s15 = scalar_lea.sflag [#allocation6], %s785_s18 }
  0x57   : > { %s193_s19 = scalar_lea.vmem [#allocation5], %s389_s5 }
  0x58   : > { %587 = dma.done.wait (%p865_p2), %s190_s15, 32  }
  0x59   : > { %589 = vsyncadd (%p865_p2), %s190_s15, 4294967264  ;;  %v220_v0 = vld [vmem:[%s184_s6] sm:$0x3]  ;;  %v391_v1 = vld [vmem:[%s184_s6 + $0x2] sm:$0x3]  ;;  %vm245_vm0 = vcmask 1041408   ;;  %v253_v26 = vlaneseq }
  0x5a   : > { %v224_v2 = vsub.f32 %v220_v0, %v391_v1  ;;  %v225_v8 = vmax.f32 %v220_v0, %v391_v1  ;;  %v223_v12 = vld [vmem:[%s193_s19] sm:$0x3]  ;;  %s390_s21 = sshll.u32 %s785_s18, 3  ;;  %s393_s27 = sshll.u32 %s608_s12, 7 }
  0x5b   : > { %v241_v17 = vsub.f32 1.0, %v223_v12  ;;  %v254_v29 = vshrl.u32 %v253_v26, 7  ;;  %s218_s26 = scalar_lea.vmem [#allocation7], %s390_s21  ;;  %s806_s3 = scalar_lea.hbm %s854_s2, %s393_s27 }
  0x5c   : > { %v226_v3 = vand.u32 2147483647, %v224_v2  ;;  %s273_s30 = sshll.u32 %s218_s26, 4  ;;  %s259_s25 = scalar_lea.sflag [#allocation4], %s785_s18  ;;  %s801_s30 = int_to_ptr.vmem [resolvable:$true] %s273_s30 }
  0x5d   : > { %vm255_vm1 = vcmp.eq.s32.totalorder %v254_v29, 0  ;;  %s530_s7 = scalar_lea.vmem %s801_s30, 128  ;;  %p866_p13 = scmp.ne.s32.totalorder %s859_s22, 0 }
  0x5e   : > { %v227_v4 = vsub.f32 0.0, %v226_v3  ;;  %p531_p8 = scmp.ne.s32.totalorder %s801_s30, %s530_s7  ;;  %s622_s12 = smov [#allocation7]  }
  0x5f   : > { %s534_s8 = sshll.u32 %s622_s12, 4  ;;  %s535_s8 = int_to_ptr.vmem [resolvable:$false] %s534_s8 }
  0x60   : > { %v228_v5 = vmul.f32 1.442695, %v227_v4  ;;  %p532_p11 = pnand %p531_p8, %p866_p13  ;;  %s536_s16 = scalar_lea.vmem %s535_s8, 256 }
  0x61   : > { %p537_p6 = scmp.lt.s32.totalorder %s801_s30, %s535_s8  ;;  %p538_p7 = scmp.lt.s32.totalorder %s536_s16, %s530_s7 }
  0x62   : > { %466 = vpow2.f32 %v228_v5  ;;  %p533_p4 = pneg %p532_p11 }
  0x63   : > { %p539_p0 = por %p538_p7, %p537_p6 }
  0x65   : > { %p540_p9 = pnand %p539_p0, %p533_p4 }
  0x6c   : > { %v467_v6 = vpop.eup %466 }
  0x6d   : > { %v230_v7 = vadd.f32 1.0, %v467_v6 }
  0x6f   : > { %468 = vlog2.f32 %v230_v7 }
  0x79   : > { %v469_v9 = vpop.eup %468 }
  0x7a   : > { %v232_v10 = vmul.f32 0.6931472, %v469_v9 }
  0x7c   : > { %v233_v11 = vadd.f32 %v232_v10, %v225_v8 }
  0x7e   : > { %v234_v13 = vsub.f32 %v220_v0, %v233_v11  ;;  %v237_v14 = vsub.f32 %v391_v1, %v233_v11 }
  0x80   : > { %v235_v15 = vmax.f32 %v234_v13, -11.512925  ;;  %v238_v16 = vmax.f32 %v237_v14, -11.512925 }
  0x82   : > { %v236_v18 = vmin.f32 %v235_v15, -1.000005e-05  ;;  %v239_v19 = vmin.f32 %v238_v16, -1.000005e-05 }
  0x84   : > { %v240_v20 = vmul.f32 %v236_v18, %v223_v12  ;;  %v242_v21 = vmul.f32 %v241_v17, %v239_v19 }
  0x86   : > { %v243_v22 = vadd.f32 %v242_v21, %v240_v20 }
  0x88   : > { %v244_v23 = vsub.f32 0.0, %v243_v22 }
  0x8a   : > { %v246_v24 = vsel %vm245_vm0, %v244_v23, 0.0 }
  0x8b   : > { %v247_v25 = vrot.slane %v246_v24, 4 }
  0x8d   : > { %v248_v27 = vadd.f32 %v247_v25, %v246_v24 }
  0x8f   : > { %v249_v28 = vrot.slane %v248_v27, 2 }
  0x91   : > { %v250_v30 = vadd.f32 %v249_v28, %v248_v27 }
  0x93   : > { %v251_v31 = vrot.slane %v250_v30, 1 }
  0x95   : > { %v252_v32 = vadd.f32 %v251_v31, %v250_v30 }
  0x97   : > { %v256_v33 = vsel %vm255_vm1, %v252_v32, 0.0 }
  0x98   : > { %257 = vst [vmem:[%s218_s26] sm:$0xff] %v256_v33 }
  0x99   : > { %543 = shalt.err (!%p540_p9)
}
  0x9a   : > { %s544_s18 = scalar_lea.hbm %s806_s3, 128  ;;  %s548_s6 = scalar_lea.hbm %s854_s2, 512 }
  0x9b   : > { %p545_p5 = scmp.ne.s32.totalorder %s806_s3, %s544_s18  ;;  %p549_p3 = scmp.lt.u32.totalorder %s806_s3, %s854_s2 }
  0x9c   : > { %p550_p12 = scmp.lt.u32.totalorder %s548_s6, %s544_s18  ;;  %p552_p8 = scmp.lt.u32.totalorder %s544_s18, %s806_s3 }
  0x9d   : > { %p546_p10 = pnand %p545_p5, %p866_p13 }
  0x9e   : > { %p551_p2 = por %p550_p12, %p549_p3 }
  0x9f   : > { %p547_p1 = pneg %p546_p10 }
  0xa0   : > { %p553_p11 = por %p552_p8, %p551_p2 }
  0xa2   : > { %p554_p4 = pnand %p553_p11, %p547_p1 }
  0xa4   : > { %557 = shalt.err (!%p554_p4)
}
  0xa5   : > { %401 = dma.vmem_to_hbm [thread:$0]  (%p866_p13), %s801_s30, 128, %s806_s3, %s259_s25  }
  0xa6 PF: > { %p415_p6 = scmp.ge.s32.totalorder %s616_s14, 2  ;;  %s285_s19 = sand.u32 1, %s596_s9  }
  0xa7   : > { %p867_p7 = scmp.ne.s32.totalorder %s860_s24, 0  ;;  %s286_s21 = scalar_lea.sflag [#allocation4], %s285_s19 }
  0xa9   : > { %p411_p0 = pnand %p415_p6, %p867_p7 }
  0xab   : > { %591 = dma.done.wait (!%p411_p0), %s286_s21, 128  }
  0xac   : > { %593 = vsyncadd (!%p411_p0), %s286_s21, 4294967168  ;;  %s21_s14 = sadd.s32 1, %s616_s14   ;;  %s868_s9 = smov %s600_s10 }
  0xad   : > { %p18_p9 = scmp.ge.s32.totalorder %s21_s14, 6   ;;  %s869_s10 = smov %s604_s11 }
  0xae   : > { %s870_s11 = smov %s694_s23  ;;  %s871_s12 = smov %s612_s13 }
  0xaf   : > { %s872_s13 = smov %s874_s17  ;;  %20 = sbr.rel (!%p18_p9) target bundleno = 8 (0x8), region = 87 }
  0xb6   :  { %291 = vsyncpa [#allocation3], 1 }
  0xb7   :  { %293 = vsyncpa [#allocation3 + $0x1], 1 }
  0xb8   :  { %294 = vsyncpa [#allocation6], 1 }
  0xb9   :  { %296 = vsyncpa [#allocation6 + $0x1], 1 }
  0xba   :  { %297 = vsyncpa [#allocation4], 1 }
  0xbb   :  { %299 = vsyncpa [#allocation4 + $0x1], 1 }

</bundles_post_ra>
